<compile_context>
chip_gen: v7x
topology: tpu7x:2x2x1
jax: 0.10.0
libtpu: 0.0.40
codegen_flags: <defaults>
</compile_context>

<pallas_src>
import jax
import jax.numpy as jnp
from jax import lax
from jax.experimental import pallas as pl
from jax.experimental.pallas import tpu as pltpu


_LANE = 128
_MIB = 1024 * 1024


def _round_up(v: int, m: int) -> int:
    return ((v + m - 1) // m) * m


def _sublane(dtype) -> int:
    # Sublane (second-to-last dim) padding granularity: 8 for 4-byte, 16 for 2-byte.
    return max(8, 32 // jnp.dtype(dtype).itemsize)


def _vmem_budgets():
    """Per-chip (vmem_limit_bytes, tile working-set budget, resident-table cap)."""
    cap = None
    try:
        cap = int(getattr(pltpu.get_tpu_info(), "vmem_capacity_bytes", 0)) or None
    except Exception:
        cap = None
    if cap is None:
        cap = 64 * _MIB                              # conservative: assume v7x
    vmem_limit = min(cap - 8 * _MIB, 96 * _MIB)      # leave Mosaic scratch headroom
    tile_budget = min(vmem_limit - 8 * _MIB, 64 * _MIB)
    w_resident_max = tile_budget // 2
    return vmem_limit, tile_budget, w_resident_max


def _make_resident_kernel(bt: int):
    """Weight table resident in VMEM; `bt` batch rows handled per grid step."""

    def kernel(subjects_ref, x_ref, w_ref, o_ref):
        # x_ref: (bt, C, Tt)   w_ref: (n_subjects, D, C)   o_ref: (bt, D, Tt)
        b = pl.program_id(0)
        for i in range(bt):                              # static unroll; bt is small
            w = w_ref[subjects_ref[b * bt + i]]          # (D, C) from resident table
            o_ref[i] = lax.dot_general(
                w, x_ref[i],
                dimension_numbers=(((1,), (0,)), ((), ())),   # (D,C)@(C,Tt)
                preferred_element_type=jnp.float32,
            ).astype(o_ref.dtype)

    return kernel


def _gathered_kernel(subjects_ref, x_ref, w_ref, o_ref):
    # x_ref: (C, Tt)   w_ref: (D, C) gathered via the scalar-prefetch index_map
    del subjects_ref
    o_ref[...] = lax.dot_general(
        w_ref[...], x_ref[...],
        dimension_numbers=(((1,), (0,)), ((), ())),
        preferred_element_type=jnp.float32,
    ).astype(o_ref.dtype)


def subject_layer(x: jax.Array, subjects: jax.Array, weights: jax.Array,
                  *, compute_dtype=jnp.bfloat16, out_dtype=None) -> jax.Array:
    """x: (B, C, T) float, subjects: (B,) int, weights: (n_subjects, C, D) -> (B, D, T)."""
    B, C, T = x.shape
    n_subjects, Cw, D = weights.shape
    assert Cw == C, (Cw, C)
    if out_dtype is None:
        out_dtype = x.dtype
    comp = jnp.dtype(compute_dtype)

    subjects_i32 = subjects.astype(jnp.int32)
    # One-time layout change + narrow cast OUTSIDE the kernel: the kernel is
    # HBM-bound, so bf16 inputs/weights are ~2x fewer bytes; f32 MXU accumulation
    # keeps numerics close to the f32 PyTorch module.
    w_t = jnp.swapaxes(weights, 1, 2).astype(comp)       # (n_subjects, D, C)
    x_c = x.astype(comp)

    comp_isz = comp.itemsize
    out_isz = jnp.dtype(out_dtype).itemsize
    sub_c = _sublane(comp)
    sub_o = _sublane(out_dtype)
    vmem_limit, tile_budget, w_resident_max = _vmem_budgets()

    # Padding-aware VMEM footprints (lane dim pads to 128, sublane dim to 8/16).
    w_table_bytes = n_subjects * _round_up(D, sub_c) * _round_up(C, _LANE) * comp_isz
    w_slice_bytes = _round_up(D, sub_c) * _round_up(C, _LANE) * comp_isz
    # Bytes per T-column of the streamed working set (double-buffered x + out).
    per_col = 2 * _round_up(C, sub_c) * comp_isz + 2 * _round_up(D, sub_o) * out_isz

    def build_and_run(w_buffers: int):
        weights_resident = w_buffers * w_table_bytes <= w_resident_max
        w_vmem = w_buffers * w_table_bytes if weights_resident else 2 * w_slice_bytes

        # Largest lane-dense T tile that fits the working-set budget.
        avail = max(tile_budget - w_vmem, per_col * _LANE)
        max_cols = max(int(avail // per_col), _LANE)
        if _round_up(T, _LANE) <= max_cols:
            t_tile = T
        else:
            t_tile = max(_LANE, (max_cols // _LANE) * _LANE)

        # Fold several batch rows into one grid step when the whole T fits in one
        # tile (amortizes the ~0.35us fixed per-step cost). Keep >=2 grid steps so
        # both v7x TensorCores get work; harmless on 1-TC v5e/v6e.
        bt = 1
        if weights_resident and t_tile == T and B > 1:
            row_bytes = per_col * _round_up(T, _LANE)
            cap_rows = max(1, int((tile_budget - w_vmem) // max(row_bytes, 1)))
            cap_rows = min(cap_rows, max(1, B // 2), 16)
            for d in range(cap_rows, 0, -1):
                if B % d == 0:
                    bt = d
                    break
        if B == 1 and pl.cdiv(T, t_tile) == 1 and T >= 2 * _LANE:
            # Degenerate (1,1) grid would leave one v7x TensorCore idle.
            t_tile = min(t_tile, _round_up(pl.cdiv(T, 2), _LANE))

        grid = (pl.cdiv(B, bt), pl.cdiv(T, t_tile))

        if weights_resident:
            x_spec = pl.BlockSpec((bt, C, t_tile), lambda b, t, subj: (b, 0, t))
            o_spec = pl.BlockSpec((bt, D, t_tile), lambda b, t, subj: (b, 0, t))
            w_kwargs = {}
            if w_buffers == 1:
                # Constant block index => DMA'd exactly once; double-buffering the
                # resident table would only waste VMEM.
                w_kwargs["pipeline_mode"] = pl.Buffered(1)
            w_spec = pl.BlockSpec((n_subjects, D, C),
                                  lambda b, t, subj: (0, 0, 0), **w_kwargs)
            kernel = _make_resident_kernel(bt)
        else:
            # Fallback: one (D, C) slice gathered per batch element via scalar
            # prefetch; same block index across the T axis => no re-DMA within a
            # batch element.
            # TODO(synk): when subjects repeat and the table is too big to keep
            # resident, sort the batch by subject (and un-permute the output) so
            # consecutive b reuse the same weight DMA.
            x_spec = pl.BlockSpec((None, C, t_tile), lambda b, t, subj: (b, 0, t))
            o_spec = pl.BlockSpec((None, D, t_tile), lambda b, t, subj: (b, 0, t))
            w_spec = pl.BlockSpec((None, D, C), lambda b, t, subj: (subj[b], 0, 0))
            kernel = _gathered_kernel

        grid_spec = pltpu.PrefetchScalarGridSpec(
            num_scalar_prefetch=1,
            grid=grid,
            in_specs=[x_spec, w_spec],
            out_specs=o_spec,
        )
        return pl.pallas_call(
            kernel,
            out_shape=jax.ShapeDtypeStruct((B, D, T), out_dtype),
            grid_spec=grid_spec,
            compiler_params=pltpu.CompilerParams(
                dimension_semantics=("parallel", "parallel"),
                vmem_limit_bytes=int(vmem_limit),
            ),
        )(subjects_i32, x_c, w_t)

    try:
        return build_and_run(1)   # single-buffered resident weight table
    except Exception:
        # Pallas version without pipeline_mode support (or tight VMEM): fall back
        # to default double buffering with conservative 2x table accounting.
        return build_and_run(2)


if __name__ == "__main__":
    key = jax.random.PRNGKey(0)
    k_w, k_x, k_s = jax.random.split(key, 3)

    # Small shapes consistent with the module's forward; T is a multiple of 128
    # so output stores are lane-dense.
    n_subjects, C, D = 3, 32, 16
    B, T = 4, 256

    weights = jax.random.normal(k_w, (n_subjects, C, D), dtype=jnp.float32)
    x = jax.random.normal(k_x, (B, C, T), dtype=jnp.float32)
    subjects = jax.random.randint(k_s, (B,), 0, n_subjects, dtype=jnp.int32)

    out = jax.block_until_ready(subject_layer(x, subjects, weights))
    assert out.shape == (B, D, T)
    assert out.dtype == x.dtype

    # Tight check against the PyTorch forward with inputs rounded to the kernel's
    # bf16 compute dtype (isolates kernel correctness from the cast).
    xb = x.astype(jnp.bfloat16).astype(jnp.float32)
    wb = weights.astype(jnp.bfloat16).astype(jnp.float32)
    ref_bf16_in = jnp.einsum("bct,bcd->bdt", xb, wb[subjects])
    assert jnp.allclose(out, ref_bf16_in, atol=1e-3, rtol=1e-3), float(
        jnp.max(jnp.abs(out - ref_bf16_in)))

    # Loose check against the pure-f32 reference (bf16 inputs, f32 accumulation).
    ref_f32 = jnp.einsum("bct,bcd->bdt", x, weights[subjects])
    assert jnp.allclose(out, ref_f32, atol=2.5e-1, rtol=5e-2), float(
        jnp.max(jnp.abs(out - ref_f32)))

    print("KERNEL_OK")
</pallas_src>

<mosaic_0001>
module attributes {stable_mosaic.version = 11 : i64} {
  func.func @kernel(%arg0: i32, %arg1: i32, %arg2: memref<4xi32, #tpu.memory_space<smem>>, %arg3: memref<2x32x256xbf16, #tpu.memory_space<vmem>>, %arg4: memref<3x16x32xbf16, #tpu.memory_space<vmem>>, %arg5: memref<2x16x256xf32, #tpu.memory_space<vmem>>) attributes {dimension_semantics = [#tpu.dimension_semantics<parallel>, #tpu.dimension_semantics<parallel>], iteration_bounds = array<i64: 2, 1>, scalar_prefetch = 1 : i64, scratch_operands = 0 : i64, tpu.core_type = #tpu.core_type<tc>, window_params = [{transform_indices = @transform_0, window_bounds = array<i64: 2, 32, 256>}, {pipeline_mode = #tpu.pipeline_mode<synchronous>, transform_indices = @transform_1, window_bounds = array<i64: 3, 16, 32>}, {transform_indices = @transform_2, window_bounds = array<i64: 2, 16, 256>}]} {
    %c2_i32 = arith.constant 2 : i32
    %0 = arith.muli %arg0, %c2_i32 : i32
    %c0_i32 = arith.constant 0 : i32
    %1 = arith.addi %0, %c0_i32 : i32
    %2 = arith.index_cast %1 : i32 to index
    %3 = memref.load %arg2[%2] : memref<4xi32, #tpu.memory_space<smem>>
    %4 = arith.index_cast %3 : i32 to index
    %c0 = arith.constant 0 : index
    %c0_0 = arith.constant 0 : index
    %5 = vector.load %arg4[%4, %c0, %c0_0] : memref<3x16x32xbf16, #tpu.memory_space<vmem>>, vector<1x16x32xbf16>
    %6 = vector.shape_cast %5 : vector<1x16x32xbf16> to vector<16x32xbf16>
    %c0_1 = arith.constant 0 : index
    %c0_2 = arith.constant 0 : index
    %c0_3 = arith.constant 0 : index
    %7 = vector.load %arg3[%c0_1, %c0_2, %c0_3] : memref<2x32x256xbf16, #tpu.memory_space<vmem>>, vector<1x32x256xbf16>
    %8 = vector.shape_cast %7 : vector<1x32x256xbf16> to vector<32x256xbf16>
    %cst = arith.constant dense<0.000000e+00> : vector<16x256xf32>
    %9 = tpu.matmul %6, %8, %cst {dimension_numbers = #tpu.dot_dimension_numbers<[1], [0], [0], [1], [0, 0, 1, 1], [], []>} : vector<16x32xbf16>, vector<32x256xbf16>, vector<16x256xf32> -> vector<16x256xf32>
    %c0_4 = arith.constant 0 : index
    %c0_5 = arith.constant 0 : index
    %c0_6 = arith.constant 0 : index
    %10 = vector.load %arg5[%c0_4, %c0_5, %c0_6] : memref<2x16x256xf32, #tpu.memory_space<vmem>>, vector<1x16x256xf32>
    %11 = vector.shape_cast %10 : vector<1x16x256xf32> to vector<16x256xf32>
    %12 = vector.shape_cast %9 : vector<16x256xf32> to vector<1x16x256xf32>
    tpu.vector_store %arg5[%c0_4, %c0_5, %c0_6], %12 {strides = array<i32>} : memref<2x16x256xf32, #tpu.memory_space<vmem>>, vector<1x16x256xf32>,
    %c2_i32_7 = arith.constant 2 : i32
    %13 = arith.muli %arg0, %c2_i32_7 : i32
    %c1_i32 = arith.constant 1 : i32
    %14 = arith.addi %13, %c1_i32 : i32
    %15 = arith.index_cast %14 : i32 to index
    %16 = memref.load %arg2[%15] : memref<4xi32, #tpu.memory_space<smem>>
    %17 = arith.index_cast %16 : i32 to index
    %c0_8 = arith.constant 0 : index
    %c0_9 = arith.constant 0 : index
    %18 = vector.load %arg4[%17, %c0_8, %c0_9] : memref<3x16x32xbf16, #tpu.memory_space<vmem>>, vector<1x16x32xbf16>
    %19 = vector.shape_cast %18 : vector<1x16x32xbf16> to vector<16x32xbf16>
    %c1 = arith.constant 1 : index
    %c0_10 = arith.constant 0 : index
    %c0_11 = arith.constant 0 : index
    %20 = vector.load %arg3[%c1, %c0_10, %c0_11] : memref<2x32x256xbf16, #tpu.memory_space<vmem>>, vector<1x32x256xbf16>
    %21 = vector.shape_cast %20 : vector<1x32x256xbf16> to vector<32x256xbf16>
    %cst_12 = arith.constant dense<0.000000e+00> : vector<16x256xf32>
    %22 = tpu.matmul %19, %21, %cst_12 {dimension_numbers = #tpu.dot_dimension_numbers<[1], [0], [0], [1], [0, 0, 1, 1], [], []>} : vector<16x32xbf16>, vector<32x256xbf16>, vector<16x256xf32> -> vector<16x256xf32>
    %c1_13 = arith.constant 1 : index
    %c0_14 = arith.constant 0 : index
    %c0_15 = arith.constant 0 : index
    %23 = vector.load %arg5[%c1_13, %c0_14, %c0_15] : memref<2x16x256xf32, #tpu.memory_space<vmem>>, vector<1x16x256xf32>
    %24 = vector.shape_cast %23 : vector<1x16x256xf32> to vector<16x256xf32>
    %25 = vector.shape_cast %22 : vector<16x256xf32> to vector<1x16x256xf32>
    tpu.vector_store %arg5[%c1_13, %c0_14, %c0_15], %25 {strides = array<i32>} : memref<2x16x256xf32, #tpu.memory_space<vmem>>, vector<1x16x256xf32>,
    return
  }
  func.func @transform_0(%arg0: i32, %arg1: i32, %arg2: memref<4xi32, #tpu.memory_space<smem>>) -> (i32, i32, i32) {
    %c0_i32 = arith.constant 0 : i32
    %c0_i32_0 = arith.constant 0 : i32
    return %arg0, %c0_i32, %arg1 : i32, i32, i32
  }
  func.func @transform_1(%arg0: i32, %arg1: i32, %arg2: memref<4xi32, #tpu.memory_space<smem>>) -> (i32, i32, i32) {
    %c0_i32 = arith.constant 0 : i32
    %c0_i32_0 = arith.constant 0 : i32
    %c0_i32_1 = arith.constant 0 : i32
    %c0_i32_2 = arith.constant 0 : i32
    return %c0_i32, %c0_i32_0, %c0_i32_1 : i32, i32, i32
  }
  func.func @transform_2(%arg0: i32, %arg1: i32, %arg2: memref<4xi32, #tpu.memory_space<smem>>) -> (i32, i32, i32) {
    %c0_i32 = arith.constant 0 : i32
    %c0_i32_0 = arith.constant 0 : i32
    return %arg0, %c0_i32, %arg1 : i32, i32, i32
  }
}

module attributes {stable_mosaic.version = 11 : i64} {
  func.func @kernel(%arg0: i32, %arg1: i32, %arg2: memref<4xi32, #tpu.memory_space<smem>>, %arg3: memref<2x32x256xbf16, #tpu.memory_space<vmem>>, %arg4: memref<3x16x32xbf16, #tpu.memory_space<vmem>>, %arg5: memref<2x16x256xf32, #tpu.memory_space<vmem>>) attributes {dimension_semantics = [#tpu.dimension_semantics<parallel>, #tpu.dimension_semantics<parallel>], iteration_bounds = array<i64: 2, 1>, scalar_prefetch = 1 : i64, scratch_operands = 0 : i64, tpu.core_type = #tpu.core_type<tc>, window_params = [{transform_indices = @transform_0, window_bounds = array<i64: 2, 32, 256>}, {pipeline_mode = #tpu.pipeline_mode<synchronous>, transform_indices = @transform_1, window_bounds = array<i64: 3, 16, 32>}, {transform_indices = @transform_2, window_bounds = array<i64: 2, 16, 256>}]} {
    %c2_i32 = arith.constant 2 : i32
    %0 = arith.muli %arg0, %c2_i32 : i32
    %c0_i32 = arith.constant 0 : i32
    %1 = arith.addi %0, %c0_i32 : i32
    %2 = arith.index_cast %1 : i32 to index
    %3 = memref.load %arg2[%2] : memref<4xi32, #tpu.memory_space<smem>>
    %4 = arith.index_cast %3 : i32 to index
    %c0 = arith.constant 0 : index
    %c0_0 = arith.constant 0 : index
    %5 = vector.load %arg4[%4, %c0, %c0_0] : memref<3x16x32xbf16, #tpu.memory_space<vmem>>, vector<1x16x32xbf16>
    %6 = vector.shape_cast %5 : vector<1x16x32xbf16> to vector<16x32xbf16>
    %c0_1 = arith.constant 0 : index
    %c0_2 = arith.constant 0 : index
    %c0_3 = arith.constant 0 : index
    %7 = vector.load %arg3[%c0_1, %c0_2, %c0_3] : memref<2x32x256xbf16, #tpu.memory_space<vmem>>, vector<1x32x256xbf16>
    %8 = vector.shape_cast %7 : vector<1x32x256xbf16> to vector<32x256xbf16>
    %cst = arith.constant dense<0.000000e+00> : vector<16x256xf32>
    %9 = tpu.matmul %6, %8, %cst {dimension_numbers = #tpu.dot_dimension_numbers<[1], [0], [0], [1], [0, 0, 1, 1], [], []>} : vector<16x32xbf16>, vector<32x256xbf16>, vector<16x256xf32> -> vector<16x256xf32>
    %c0_4 = arith.constant 0 : index
    %c0_5 = arith.constant 0 : index
    %c0_6 = arith.constant 0 : index
    %10 = vector.load %arg5[%c0_4, %c0_5, %c0_6] : memref<2x16x256xf32, #tpu.memory_space<vmem>>, vector<1x16x256xf32>
    %11 = vector.shape_cast %10 : vector<1x16x256xf32> to vector<16x256xf32>
    %12 = vector.shape_cast %9 : vector<16x256xf32> to vector<1x16x256xf32>
    tpu.vector_store %arg5[%c0_4, %c0_5, %c0_6], %12 {strides = array<i32>} : memref<2x16x256xf32, #tpu.memory_space<vmem>>, vector<1x16x256xf32>,
    %c2_i32_7 = arith.constant 2 : i32
    %13 = arith.muli %arg0, %c2_i32_7 : i32
    %c1_i32 = arith.constant 1 : i32
    %14 = arith.addi %13, %c1_i32 : i32
    %15 = arith.index_cast %14 : i32 to index
    %16 = memref.load %arg2[%15] : memref<4xi32, #tpu.memory_space<smem>>
    %17 = arith.index_cast %16 : i32 to index
    %c0_8 = arith.constant 0 : index
    %c0_9 = arith.constant 0 : index
    %18 = vector.load %arg4[%17, %c0_8, %c0_9] : memref<3x16x32xbf16, #tpu.memory_space<vmem>>, vector<1x16x32xbf16>
    %19 = vector.shape_cast %18 : vector<1x16x32xbf16> to vector<16x32xbf16>
    %c1 = arith.constant 1 : index
    %c0_10 = arith.constant 0 : index
    %c0_11 = arith.constant 0 : index
    %20 = vector.load %arg3[%c1, %c0_10, %c0_11] : memref<2x32x256xbf16, #tpu.memory_space<vmem>>, vector<1x32x256xbf16>
    %21 = vector.shape_cast %20 : vector<1x32x256xbf16> to vector<32x256xbf16>
    %cst_12 = arith.constant dense<0.000000e+00> : vector<16x256xf32>
    %22 = tpu.matmul %19, %21, %cst_12 {dimension_numbers = #tpu.dot_dimension_numbers<[1], [0], [0], [1], [0, 0, 1, 1], [], []>} : vector<16x32xbf16>, vector<32x256xbf16>, vector<16x256xf32> -> vector<16x256xf32>
    %c1_13 = arith.constant 1 : index
    %c0_14 = arith.constant 0 : index
    %c0_15 = arith.constant 0 : index
    %23 = vector.load %arg5[%c1_13, %c0_14, %c0_15] : memref<2x16x256xf32, #tpu.memory_space<vmem>>, vector<1x16x256xf32>
    %24 = vector.shape_cast %23 : vector<1x16x256xf32> to vector<16x256xf32>
    %25 = vector.shape_cast %22 : vector<16x256xf32> to vector<1x16x256xf32>
    tpu.vector_store %arg5[%c1_13, %c0_14, %c0_15], %25 {strides = array<i32>} : memref<2x16x256xf32, #tpu.memory_space<vmem>>, vector<1x16x256xf32>,
    return
  }
  func.func @transform_0(%arg0: i32, %arg1: i32, %arg2: memref<4xi32, #tpu.memory_space<smem>>) -> (i32, i32, i32) {
    %c0_i32 = arith.constant 0 : i32
    %c0_i32_0 = arith.constant 0 : i32
    return %arg0, %c0_i32, %arg1 : i32, i32, i32
  }
  func.func @transform_1(%arg0: i32, %arg1: i32, %arg2: memref<4xi32, #tpu.memory_space<smem>>) -> (i32, i32, i32) {
    %c0_i32 = arith.constant 0 : i32
    %c0_i32_0 = arith.constant 0 : i32
    %c0_i32_1 = arith.constant 0 : i32
    %c0_i32_2 = arith.constant 0 : i32
    return %c0_i32, %c0_i32_0, %c0_i32_1 : i32, i32, i32
  }
  func.func @transform_2(%arg0: i32, %arg1: i32, %arg2: memref<4xi32, #tpu.memory_space<smem>>) -> (i32, i32, i32) {
    %c0_i32 = arith.constant 0 : i32
    %c0_i32_0 = arith.constant 0 : i32
    return %arg0, %c0_i32, %arg1 : i32, i32, i32
  }
}

</mosaic_0001>

<bundles_post_ra>
// kernel: tpu_custom_call.1
= control target key start
LH: loop header
LB: loop body
LE: loop exit
PB: predicated region body
PF: predicated region fallthrough
CT: control target
= control target key end

     0   :  { %s1069_s0 = inlined_call_operand.hbm [shape: s32[4], index: 0, kind: input, shape index: {}]   ;;  %s1070_s1 = inlined_call_operand.hbm [shape: bf16[4,32,256], index: 1, kind: input, shape index: {}]   ;;  %s1071_s2 = inlined_call_operand.hbm [shape: bf16[3,16,32], index: 2, kind: input, shape index: {}]   ;;  %s1072_s3 = inlined_call_operand.hbm [shape: f32[4,16,256], index: 3, kind: output, shape index: {}]  }
   0x1   :  { %s644_s14 = scalar_lea.hbm %s1069_s0, 16 }
   0x2   :  { %p645_p0 = scmp.ne.s32.totalorder %s1069_s0, %s644_s14  ;;  %p648_p1 = scmp.lt.u32.totalorder %s644_s14, %s1069_s0 }
   0x4   :  { %p650_p2 = pnand %p648_p1, %p645_p0 }
   0x6   :  { %653 = shalt.err (!%p650_p2)  }
   0x7   :  { %s802_s19 = smov [#allocation3]  }
   0x8   :  { %9 = dma.hbm_to_smem %s1069_s0, 16, %s802_s19, [#allocation2] }
   0x9   :  { %764 = dma.done.wait [#allocation2], 16 }
   0xa   :  { %765 = vsyncadd [#allocation2], 4294967280 }
   0xb   :  { %11 = sfence }
   0xc   :  { %12 = vsyncpa [#allocation5], 0 }
   0xd   :  { %14 = vsyncpa [#allocation5 + $0x1], 0 }
   0xe   :  { %15 = vsyncpa [#allocation8], 0 }
   0xf   :  { %16 = vsyncpa [#allocation6], 0 }
  0x10   :  { %18 = vsyncpa [#allocation6 + $0x1], 0  ;;  %s845_s22 = smov 0   ;;  %s847_s23 = smov 0  }
  0x11   :  { %s849_s24 = smov 0   ;;  %s851_s25 = smov 0  }
  0x12   :  { %s853_s26 = smov 0   ;;  %s855_s27 = smov 0  }
  0x13 LB: > { %s499_s0 = sadd.s32 4294967295, %s800_s27   ;;  %s500_s28 = sadd.s32 4294967294, %s800_s27   ;;  %s800_s27 = sphi %s855_s27, %s24_s27   ;;  %s796_s26 = sphi %s853_s26, %s1096_s26   ;;  %s792_s25 = sphi %s851_s25, %s1095_s25   ;;  %s788_s24 = sphi %s849_s24, %s1094_s24   ;;  %s784_s23 = sphi %s847_s23, %s1093_s23   ;;  %s780_s22 = sphi %s845_s22, %s1092_s22  }
  0x14   : > { %p58_p3 = scmp.ne.s32.totalorder %s784_s23, %s780_s22  ;;  %p879_p4 = scmp.eq.s32.totalorder %s499_s0, 0 }
  0x15   : > { %p883_p5 = scmp.eq.s32.totalorder %s499_s0, 1  ;;  %p111_p6 = scmp.eq.s32.totalorder %s500_s28, 1 }
  0x16   : > { %s1077_s29 = scalar_select %p879_p4, 1, 0 }
  0x17   : > { %s1078_s30 = scalar_select %p883_p5, 1, 0 }
  0x18   : > { %p889_p7 = por %p879_p4, %p58_p3  ;;  %p501_p8 = scmp.ge.s32.totalorder %s800_s27, 1 }
  0x19   : > { %p894_p9 = por %p111_p6, %p58_p3  ;;  %p118_p10 = scmp.lt.s32.totalorder %s800_s27, 3 }
  0x1a   : > { %s1079_s4 = scalar_select %p889_p7, 1, 0 }
  0x1b   : > { %s1080_s5 = scalar_select %p894_p9, 1, 0 }
  0x1c   : > { %p899_p11 = pnand %p501_p8, %p118_p10  ;;  %s803_s7 = smov [#allocation7]  }
  0x1d   : > { %s130_s8 = sshll.u32 %s803_s7, 4  ;;  %s36_s10 = sadd.s32 1, %s796_s26  ;;  %s131_s8 = int_to_ptr.vmem [resolvable:$true] %s130_s8 }
  0x1e   : > { %s1081_s6 = scalar_select %p899_p11, 1, 0 }
  0x1f   : > { %p557_p12 = pneg %p899_p11  ;;  %s654_s13 = scalar_lea.hbm %s1071_s2, 384 }
  0x20   : > { %p655_p1 = scmp.ne.s32.totalorder %s1071_s2, %s654_s13  ;;  %p661_p8 = scmp.lt.u32.totalorder %s654_s13, %s1071_s2 }
  0x21   : > { %p908_p0 = pnand %p557_p12, %p879_p4 }
  0x23   : > { %p656_p2 = pneg %p908_p0 }
  0x25   : > { %p657_p3 = pnand %p656_p2, %p655_p1 }
  0x27   : > { %p658_p6 = pneg %p657_p3 }
  0x29   : > { %p663_p10 = pnand %p661_p8, %p658_p6 }
  0x2b   : > { %666 = shalt.err (!%p663_p10)
}
  0x2c   : > { %s667_s18 = scalar_lea.vmem %s131_s8, 384  ;;  %p675_p4 = scmp.lt.s32.totalorder %s131_s8, %s131_s8 }
  0x2d   : > { %p668_p12 = scmp.ne.s32.totalorder %s131_s8, %s667_s18  ;;  %p676_p7 = scmp.lt.s32.totalorder %s667_s18, %s667_s18 }
  0x2f   : > { %p670_p13 = pnand %p668_p12, %p656_p2  ;;  %p677_p11 = por %p676_p7, %p675_p4 }
  0x31   : > { %p671_p9 = pneg %p670_p13 }
  0x33   : > { %p678_p5 = pnand %p677_p11, %p671_p9 }
  0x35   : > { %681 = shalt.err (!%p678_p5)
}
  0x36   : > { %s804_s19 = smov 64   ;;  %s805_s20 = smov 4  }
  0x37   : > { %560 = dma.hbm_to_vmem [thread:$0]  (!%p908_p0), %s1071_s2, 384, %s131_s8, [#allocation8], %s804_s19, %s804_s19, %s805_s20  }
  0x38   : > { %p38_p4 = scmp.ge.s32.totalorder %s36_s10, 2  ;;  %s45_s28 = sadd.s32 1, %s788_s24 }
  0x39   : > { %p52_p5 = scmp.ne.s32.totalorder %s788_s24, %s784_s23  ;;  %p53_p7 = scmp.eq.s32.totalorder %s800_s27, 0 }
  0x3a   : > { %s1098_s10 = smov (%p38_p4, %s36_s10), 0  ;;  %p1084_p11 = scmp.ne.s32.totalorder %s1078_s30, 0 }
  0x3b   : > { %p935_p9 = por %p53_p7, %p52_p5  ;;  %s40_s9 = ssub.s32 %s796_s26, %s1098_s10 }
  0x3c   : > { %p941_p13 = por %p1084_p11, %p52_p5  ;;  %p570_p1 = scmp.lt.s32.totalorder %s800_s27, 2 }
  0x3d   : > { %p43_p0 = scmp.eq.s32.totalorder %s40_s9, 0  ;;  %s144_s8 = sand.u32 1, %s788_s24  }
  0x3e   : > { %s504_s12 = sshll.u32 %s144_s8, 6  ;;  %s544_s14 = sshll.u32 %s796_s26, 10 }
  0x3f   : > { %s950_s13 = scalar_select %p43_p0, %s788_s24, %s45_s28  }
  0x40   : > { %s956_s17 = scalar_lea.hbm %s1070_s1, %s544_s14  ;;  %s148_s30 = scalar_lea.vmem [#allocation4], %s504_s12 }
  0x41   : > { %s158_s18 = sshll.u32 %s148_s30, 4  ;;  %p962_p2 = pnand %p570_p1, %p935_p9  ;;  %s958_s18 = int_to_ptr.vmem [resolvable:$true] %s158_s18 }
  0x42   : > { %s966_s20 = scalar_lea.sflag [#allocation5], %s144_s8  ;;  %s682_s21 = scalar_lea.hbm %s956_s17, 1024 }
  0x43   : > { %p683_p3 = scmp.ne.s32.totalorder %s956_s17, %s682_s21  ;;  %p684_p6 = pneg %p962_p2 }
  0x44   : > { %s687_s7 = scalar_lea.hbm %s1070_s1, 2048  ;;  %p688_p12 = scmp.lt.u32.totalorder %s956_s17, %s1070_s1 }
  0x45   : > { %p685_p8 = pnand %p684_p6, %p683_p3  ;;  %p689_p4 = scmp.lt.u32.totalorder %s687_s7, %s682_s21 }
  0x46   : > { %p691_p7 = scmp.lt.u32.totalorder %s682_s21, %s956_s17 }
  0x47   : > { %p686_p10 = pneg %p685_p8  ;;  %p690_p5 = por %p689_p4, %p688_p12 }
  0x49   : > { %p692_p9 = por %p691_p7, %p690_p5 }
  0x4b   : > { %p693_p11 = pnand %p692_p9, %p686_p10 }
  0x4d   : > { %696 = shalt.err (!%p693_p11)
}
  0x4e   : > { %s697_s8 = scalar_lea.vmem %s958_s18, 1024  ;;  %s806_s14 = smov [#allocation4]  }
  0x4f   : > { %p698_p1 = scmp.ne.s32.totalorder %s958_s18, %s697_s8  ;;  %s702_s15 = sshll.u32 %s806_s14, 4  ;;  %s703_s15 = int_to_ptr.vmem [resolvable:$false] %s702_s15 }
  0x50   : > { %s704_s16 = scalar_lea.vmem %s703_s15, 2048  ;;  %p705_p8 = scmp.lt.s32.totalorder %s958_s18, %s703_s15 }
  0x51   : > { %p700_p0 = pnand %p698_p1, %p684_p6  ;;  %p706_p12 = scmp.lt.s32.totalorder %s704_s16, %s697_s8 }
  0x53   : > { %p701_p3 = pneg %p700_p0  ;;  %p707_p4 = por %p706_p12, %p705_p8 }
  0x55   : > { %p708_p5 = pnand %p707_p4, %p701_p3 }
  0x57   : > { %711 = shalt.err (!%p708_p5)
}
  0x58   : > { %s807_s30 = smov 128   ;;  %s808_s21 = smov 8  }
  0x59   : > { %564 = dma.hbm_to_vmem [thread:$0]  (!%p962_p2), %s956_s17, 1024, %s958_s18, %s966_s20, %s807_s30, %s807_s30, %s808_s21  }
  0x5a   : > { %p1087_p6 = scmp.ne.s32.totalorder %s1081_s6, 0 }
  0x5b   : > { %s997_s0 = sand.u32 (!%p1087_p6), 1, %s784_s23   ;;  %p1088_p10 = scmp.ne.s32.totalorder (!%p1087_p6), %s1079_s4, 0 }
  0x5c   : > { %170 = sbr.rel (%p1087_p6) target bundleno = 344 (0x158), region = 28  ;;  %s509_s28 = sshll.u32 (!%p1087_p6), %s997_s0, 6 }
  0x5d   : > { %s173_s7 = scalar_lea.sflag (!%p1087_p6), [#allocation5], %s997_s0  ;;  %s176_s9 = scalar_lea.vmem (!%p1087_p6), [#allocation4], %s509_s28 }
  0x63   : > { %767 = dma.done.wait (%p1088_p10), %s173_s7, 1024  }
  0x64   : > { %769 = vsyncadd (%p1088_p10), %s173_s7, 4294966272  ;;  %p1089_p2 = scmp.ne.s32.totalorder %s1077_s29, 0 }
  0x66   : > { %771 = dma.done.wait (%p1089_p2), [#allocation8], 384  }
  0x67   : > { %773 = vsyncadd (%p1089_p2), [#allocation8], 4294966912  ;;  %s512_s6 = sshll.u32 %s792_s25, 1  ;;  %v809_v0 = vmov 0   ;;  %v630_v1 = vld [vmem:[%s176_s9 + $0x4] ss:$8 sps:$4 sm:$0xff]  }
  0x68   : > { %278 = vmatprep.mubr.bf16.mxu0 %v809_v0  ;;  %365 = vmatprep.mubr.bf16.mxu1 %v809_v0  ;;  %s207_s17 = sld [smem:[#allocation3 + %s512_s6]]  ;;  %s293_s18 = sadd.s32 1, %s512_s6  ;;  %v632_v2 = vld [vmem:[%s176_s9 + $0x24] ss:$8 sps:$4 sm:$0xff]   ;;  %v634_v3 = vld [vmem:[%s176_s9] ss:$8 sps:$4 sm:$0xff]  }
  0x69   : > { %s294_s19 = sld [smem:[#allocation3 + %s293_s18]]  ;;  %246 = vmatprep.subr.bf16.mxu0 %v630_v1  ;;  %v635_v4 = vld [vmem:[%s176_s9 + $0x20] ss:$8 sps:$4 sm:$0xff]   ;;  %333 = vmatprep.subr.bf16.mxu1 %v632_v2  ;;  %v636_v5 = vld [vmem:[%s176_s9 + $0x14] ss:$8 sps:$4 sm:$0xff]   ;;  %vm242_vm0 = vcmask 261120  }
  0x6a   : > { %247 = vmatpush1.bf16.msra.mxu0 %v634_v3  ;;  %334 = vmatpush1.bf16.msra.mxu1 %v635_v4  ;;  %v638_v6 = vld [vmem:[%s176_s9 + $0x34] ss:$8 sps:$4 sm:$0xff]   ;;  %v640_v7 = vld [vmem:[%s176_s9 + $0x10] ss:$8 sps:$4 sm:$0xff]   ;;  %s200_s8 = scalar_lea.vmem [#allocation9], %s509_s28  ;;  %s548_s15 = sshll.u32 %s792_s25, 10 }
  0x6b   : > { %248 = vmatprep.subr.bf16.mxu0 %v636_v5  ;;  %v641_v8 = vld [vmem:[%s176_s9 + $0x30] ss:$8 sps:$4 sm:$0xff]   ;;  %335 = vmatprep.subr.bf16.mxu1 %v638_v6  ;;  %s398_s14 = sshll.u32 %s200_s8, 4  ;;  %s1020_s21 = scalar_lea.hbm %s1072_s3, %s548_s15  ;;  %s1015_s14 = int_to_ptr.vmem [resolvable:$true] %s398_s14 }
  0x6c   : > { %s382_s25 = scalar_lea.sflag [#allocation6], %s997_s0  ;;  %s712_s28 = scalar_lea.vmem %s1015_s14, 1024 }
  0x6d   : > { %p713_p7 = scmp.ne.s32.totalorder %s1015_s14, %s712_s28  ;;  %s810_s7 = smov [#allocation9]  }
  0x6e   : > { %s545_s20 = sshll.u32 %s207_s17, 3  ;;  %249 = vmatpush1.bf16.msra.mxu0 %v640_v7  ;;  %336 = vmatpush1.bf16.msra.mxu1 %v641_v8  ;;  %s716_s9 = sshll.u32 %s810_s7, 4  ;;  %s717_s9 = int_to_ptr.vmem [resolvable:$false] %s716_s9 }
  0x6f   : > { %s546_s12 = sshll.u32 %s294_s19, 3  ;;  %s210_s29 = scalar_lea.vmem [#allocation7], %s545_s20 }
  0x70   : > { %s297_s4 = scalar_lea.vmem [#allocation7], %s546_s12  ;;  %v642_v9 = vld [vmem:[%s210_s29] sm:$0xff]   ;;  %p714_p9 = pnand %p713_p7, %p941_p13 }
  0x71   : > { %v643_v10 = vld [vmem:[%s297_s4] sm:$0xff]   ;;  %520 = vmatmul.mubr.msk.bf16.vlgmr.msra.gmra.mrb[0].mxu0 %vm242_vm0, %v642_v9  ;;  %s718_s6 = scalar_lea.vmem %s717_s9, 2048  ;;  %p719_p1 = scmp.lt.s32.totalorder %s1015_s14, %s717_s9 }
  0x72   : > { %532 = vmatmul.mubr.msk.bf16.vlgmr.msra.gmra.mrb[0].mxu1 %vm242_vm0, %v643_v10  ;;  %p715_p11 = pneg %p714_p9  ;;  %p720_p0 = scmp.lt.s32.totalorder %s718_s6, %s712_s28 }
  0x74   : > { %p721_p3 = por %p720_p0, %p719_p1 }
  0x76   : > { %p722_p8 = pnand %p721_p3, %p715_p11 }
 0x144   : > { %v280_v11 = vpop.f32.mrb[0].mxu0 }
 0x145   : > { %v367_v12 = vpop.f32.mrb[0].mxu1  ;;  %289 = vst [vmem:[%s200_s8] sm:$0xff] %v280_v11  ;;  %v282_v13 = vpop.f32.mrb[1].mxu0 }
 0x146   : > { %533 = vst [vmem:[%s200_s8 + $0x20] sm:$0xff] %v367_v12  ;;  %v369_v14 = vpop.f32.mrb[1].mxu1  ;;  %290 = vst [vmem:[%s200_s8 + $0x8] sm:$0xff] %v282_v13  ;;  %v284_v15 = vpop.f32.mrb[2].mxu0 }
 0x147   : > { %534 = vst [vmem:[%s200_s8 + $0x28] sm:$0xff] %v369_v14  ;;  %v371_v16 = vpop.f32.mrb[2].mxu1  ;;  %291 = vst [vmem:[%s200_s8 + $0x10] sm:$0xff] %v284_v15  ;;  %v286_v17 = vpop.f32.mrb[3].mxu0 }
 0x148   : > { %535 = vst [vmem:[%s200_s8 + $0x30] sm:$0xff] %v371_v16  ;;  %v373_v18 = vpop.f32.mrb[3].mxu1  ;;  %292 = vst [vmem:[%s200_s8 + $0x18] sm:$0xff] %v286_v17 }
 0x149   : > { %536 = vst [vmem:[%s200_s8 + $0x38] sm:$0xff] %v373_v18 }
 0x14a   : > { %725 = shalt.err (!%p722_p8)
}
 0x14b   : > { %s726_s17 = scalar_lea.hbm %s1020_s21, 1024  ;;  %s730_s20 = scalar_lea.hbm %s1072_s3, 2048 }
 0x14c   : > { %p727_p12 = scmp.ne.s32.totalorder %s1020_s21, %s726_s17  ;;  %p731_p6 = scmp.lt.u32.totalorder %s1020_s21, %s1072_s3 }
 0x14d   : > { %p732_p10 = scmp.lt.u32.totalorder %s730_s20, %s726_s17  ;;  %p734_p7 = scmp.lt.u32.totalorder %s726_s17, %s1020_s21 }
 0x14e   : > { %p728_p4 = pnand %p727_p12, %p941_p13 }
 0x14f   : > { %p733_p2 = por %p732_p10, %p731_p6 }
 0x150   : > { %p729_p5 = pneg %p728_p4 }
 0x151   : > { %p735_p9 = por %p734_p7, %p733_p2 }
 0x153   : > { %p736_p11 = pnand %p735_p9, %p729_p5 }
 0x155   : > { %739 = shalt.err (!%p736_p11)
}
 0x156   : > { %s811_s4 = smov 256   ;;  %s812_s8 = smov 16  }
 0x157   : > { %555 = dma.vmem_to_hbm [thread:$0]  (%p941_p13), %s1015_s14, 1024, %s1020_s21, %s382_s25, %s811_s4, %s811_s4, %s812_s8  }
 0x158 PF: > { %s413_s15 = sand.u32 1, %s780_s22   ;;  %p1090_p1 = scmp.ne.s32.totalorder %s1080_s5, 0 }
 0x159   : > { %p1091_p0 = scmp.ge.s32.totalorder %s800_s27, 2  ;;  %s414_s16 = scalar_lea.sflag [#allocation6], %s413_s15 }
 0x15b   : > { %p566_p3 = pnand %p1091_p0, %p1090_p1 }
 0x15d   : > { %775 = dma.done.wait (!%p566_p3), %s414_s16, 1024  }
 0x15e   : > { %777 = vsyncadd (!%p566_p3), %s414_s16, 4294966272  ;;  %s24_s27 = sadd.s32 1, %s800_s27   ;;  %s1092_s22 = smov %s784_s23 }
 0x15f   : > { %p21_p8 = scmp.ge.s32.totalorder %s24_s27, 4   ;;  %s1093_s23 = smov %s788_s24 }
 0x160   : > { %s1094_s24 = smov %s950_s13  ;;  %s1095_s25 = smov %s796_s26 }
 0x161   : > { %s1096_s26 = smov %s1098_s10  ;;  %23 = sbr.rel (!%p21_p8) target bundleno = 19 (0x13), region = 81 }
 0x168   :  { %419 = vsyncpa [#allocation5], 1 }
 0x169   :  { %421 = vsyncpa [#allocation5 + $0x1], 1 }
 0x16a   :  { %422 = vsyncpa [#allocation8], 1 }
 0x16b   :  { %423 = vsyncpa [#allocation6], 1 }
 0x16c   :  { %425 = vsyncpa [#allocation6 + $0x1], 1 }

// kernel: tpu_custom_call.1
= control target key start
LH: loop header
LB: loop body
LE: loop exit
PB: predicated region body
PF: predicated region fallthrough
CT: control target
= control target key end

     0   :  { %s1069_s0 = inlined_call_operand.hbm [shape: s32[4], index: 0, kind: input, shape index: {}]   ;;  %s1070_s1 = inlined_call_operand.hbm [shape: bf16[4,32,256], index: 1, kind: input, shape index: {}]   ;;  %s1071_s2 = inlined_call_operand.hbm [shape: bf16[3,16,32], index: 2, kind: input, shape index: {}]   ;;  %s1072_s3 = inlined_call_operand.hbm [shape: f32[4,16,256], index: 3, kind: output, shape index: {}]  }
   0x1   :  { %s644_s14 = scalar_lea.hbm %s1069_s0, 16 }
   0x2   :  { %p645_p0 = scmp.ne.s32.totalorder %s1069_s0, %s644_s14  ;;  %p648_p1 = scmp.lt.u32.totalorder %s644_s14, %s1069_s0 }
   0x4   :  { %p650_p2 = pnand %p648_p1, %p645_p0 }
   0x6   :  { %653 = shalt.err (!%p650_p2)  }
   0x7   :  { %s802_s19 = smov [#allocation3]  }
   0x8   :  { %9 = dma.hbm_to_smem %s1069_s0, 16, %s802_s19, [#allocation2] }
   0x9   :  { %764 = dma.done.wait [#allocation2], 16 }
   0xa   :  { %765 = vsyncadd [#allocation2], 4294967280 }
   0xb   :  { %11 = sfence }
   0xc   :  { %12 = vsyncpa [#allocation5], 0 }
   0xd   :  { %14 = vsyncpa [#allocation5 + $0x1], 0 }
   0xe   :  { %15 = vsyncpa [#allocation8], 0 }
   0xf   :  { %16 = vsyncpa [#allocation6], 0 }
  0x10   :  { %18 = vsyncpa [#allocation6 + $0x1], 0  ;;  %s845_s22 = smov 0   ;;  %s847_s23 = smov 0  }
  0x11   :  { %s849_s24 = smov 0   ;;  %s851_s25 = smov 0  }
  0x12   :  { %s853_s26 = smov 0   ;;  %s855_s27 = smov 0  }
  0x13 LB: > { %s499_s0 = sadd.s32 4294967295, %s800_s27   ;;  %s500_s28 = sadd.s32 4294967294, %s800_s27   ;;  %s800_s27 = sphi %s855_s27, %s24_s27   ;;  %s796_s26 = sphi %s853_s26, %s1096_s26   ;;  %s792_s25 = sphi %s851_s25, %s1095_s25   ;;  %s788_s24 = sphi %s849_s24, %s1094_s24   ;;  %s784_s23 = sphi %s847_s23, %s1093_s23   ;;  %s780_s22 = sphi %s845_s22, %s1092_s22  }
  0x14   : > { %p58_p3 = scmp.ne.s32.totalorder %s784_s23, %s780_s22  ;;  %p879_p4 = scmp.eq.s32.totalorder %s499_s0, 0 }
  0x15   : > { %p883_p5 = scmp.eq.s32.totalorder %s499_s0, 1  ;;  %p111_p6 = scmp.eq.s32.totalorder %s500_s28, 1 }
  0x16   : > { %s1077_s29 = scalar_select %p879_p4, 1, 0 }
  0x17   : > { %s1078_s30 = scalar_select %p883_p5, 1, 0 }
  0x18   : > { %p889_p7 = por %p879_p4, %p58_p3  ;;  %p501_p8 = scmp.ge.s32.totalorder %s800_s27, 1 }
  0x19   : > { %p894_p9 = por %p111_p6, %p58_p3  ;;  %p118_p10 = scmp.lt.s32.totalorder %s800_s27, 3 }
  0x1a   : > { %s1079_s4 = scalar_select %p889_p7, 1, 0 }
  0x1b   : > { %s1080_s5 = scalar_select %p894_p9, 1, 0 }
  0x1c   : > { %p899_p11 = pnand %p501_p8, %p118_p10  ;;  %s803_s7 = smov [#allocation7]  }
  0x1d   : > { %s130_s8 = sshll.u32 %s803_s7, 4  ;;  %s36_s10 = sadd.s32 1, %s796_s26  ;;  %s131_s8 = int_to_ptr.vmem [resolvable:$true] %s130_s8 }
  0x1e   : > { %s1081_s6 = scalar_select %p899_p11, 1, 0 }
  0x1f   : > { %p557_p12 = pneg %p899_p11  ;;  %s654_s13 = scalar_lea.hbm %s1071_s2, 384 }
  0x20   : > { %p655_p1 = scmp.ne.s32.totalorder %s1071_s2, %s654_s13  ;;  %p661_p8 = scmp.lt.u32.totalorder %s654_s13, %s1071_s2 }
  0x21   : > { %p908_p0 = pnand %p557_p12, %p879_p4 }
  0x23   : > { %p656_p2 = pneg %p908_p0 }
  0x25   : > { %p657_p3 = pnand %p656_p2, %p655_p1 }
  0x27   : > { %p658_p6 = pneg %p657_p3 }
  0x29   : > { %p663_p10 = pnand %p661_p8, %p658_p6 }
  0x2b   : > { %666 = shalt.err (!%p663_p10)
}
  0x2c   : > { %s667_s18 = scalar_lea.vmem %s131_s8, 384  ;;  %p675_p4 = scmp.lt.s32.totalorder %s131_s8, %s131_s8 }
  0x2d   : > { %p668_p12 = scmp.ne.s32.totalorder %s131_s8, %s667_s18  ;;  %p676_p7 = scmp.lt.s32.totalorder %s667_s18, %s667_s18 }
  0x2f   : > { %p670_p13 = pnand %p668_p12, %p656_p2  ;;  %p677_p11 = por %p676_p7, %p675_p4 }
  0x31   : > { %p671_p9 = pneg %p670_p13 }
  0x33   : > { %p678_p5 = pnand %p677_p11, %p671_p9 }
  0x35   : > { %681 = shalt.err (!%p678_p5)
}
  0x36   : > { %s804_s19 = smov 64   ;;  %s805_s20 = smov 4  }
  0x37   : > { %560 = dma.hbm_to_vmem [thread:$0]  (!%p908_p0), %s1071_s2, 384, %s131_s8, [#allocation8], %s804_s19, %s804_s19, %s805_s20  }
  0x38   : > { %p38_p4 = scmp.ge.s32.totalorder %s36_s10, 2  ;;  %s45_s28 = sadd.s32 1, %s788_s24 }
  0x39   : > { %p52_p5 = scmp.ne.s32.totalorder %s788_s24, %s784_s23  ;;  %p53_p7 = scmp.eq.s32.totalorder %s800_s27, 0 }
  0x3a   : > { %s1098_s10 = smov (%p38_p4, %s36_s10), 0  ;;  %p1084_p11 = scmp.ne.s32.totalorder %s1078_s30, 0 }
  0x3b   : > { %p935_p9 = por %p53_p7, %p52_p5  ;;  %s40_s9 = ssub.s32 %s796_s26, %s1098_s10 }
  0x3c   : > { %p941_p13 = por %p1084_p11, %p52_p5  ;;  %p570_p1 = scmp.lt.s32.totalorder %s800_s27, 2 }
  0x3d   : > { %p43_p0 = scmp.eq.s32.totalorder %s40_s9, 0  ;;  %s144_s8 = sand.u32 1, %s788_s24  }
  0x3e   : > { %s504_s12 = sshll.u32 %s144_s8, 6  ;;  %s544_s14 = sshll.u32 %s796_s26, 10 }
  0x3f   : > { %s950_s13 = scalar_select %p43_p0, %s788_s24, %s45_s28  }
  0x40   : > { %s956_s17 = scalar_lea.hbm %s1070_s1, %s544_s14  ;;  %s148_s30 = scalar_lea.vmem [#allocation4], %s504_s12 }
  0x41   : > { %s158_s18 = sshll.u32 %s148_s30, 4  ;;  %p962_p2 = pnand %p570_p1, %p935_p9  ;;  %s958_s18 = int_to_ptr.vmem [resolvable:$true] %s158_s18 }
  0x42   : > { %s966_s20 = scalar_lea.sflag [#allocation5], %s144_s8  ;;  %s682_s21 = scalar_lea.hbm %s956_s17, 1024 }
  0x43   : > { %p683_p3 = scmp.ne.s32.totalorder %s956_s17, %s682_s21  ;;  %p684_p6 = pneg %p962_p2 }
  0x44   : > { %s687_s7 = scalar_lea.hbm %s1070_s1, 2048  ;;  %p688_p12 = scmp.lt.u32.totalorder %s956_s17, %s1070_s1 }
  0x45   : > { %p685_p8 = pnand %p684_p6, %p683_p3  ;;  %p689_p4 = scmp.lt.u32.totalorder %s687_s7, %s682_s21 }
  0x46   : > { %p691_p7 = scmp.lt.u32.totalorder %s682_s21, %s956_s17 }
  0x47   : > { %p686_p10 = pneg %p685_p8  ;;  %p690_p5 = por %p689_p4, %p688_p12 }
  0x49   : > { %p692_p9 = por %p691_p7, %p690_p5 }
  0x4b   : > { %p693_p11 = pnand %p692_p9, %p686_p10 }
  0x4d   : > { %696 = shalt.err (!%p693_p11)
}
  0x4e   : > { %s697_s8 = scalar_lea.vmem %s958_s18, 1024  ;;  %s806_s14 = smov [#allocation4]  }
  0x4f   : > { %p698_p1 = scmp.ne.s32.totalorder %s958_s18, %s697_s8  ;;  %s702_s15 = sshll.u32 %s806_s14, 4  ;;  %s703_s15 = int_to_ptr.vmem [resolvable:$false] %s702_s15 }
  0x50   : > { %s704_s16 = scalar_lea.vmem %s703_s15, 2048  ;;  %p705_p8 = scmp.lt.s32.totalorder %s958_s18, %s703_s15 }
  0x51   : > { %p700_p0 = pnand %p698_p1, %p684_p6  ;;  %p706_p12 = scmp.lt.s32.totalorder %s704_s16, %s697_s8 }
  0x53   : > { %p701_p3 = pneg %p700_p0  ;;  %p707_p4 = por %p706_p12, %p705_p8 }
  0x55   : > { %p708_p5 = pnand %p707_p4, %p701_p3 }
  0x57   : > { %711 = shalt.err (!%p708_p5)
}
  0x58   : > { %s807_s30 = smov 128   ;;  %s808_s21 = smov 8  }
  0x59   : > { %564 = dma.hbm_to_vmem [thread:$0]  (!%p962_p2), %s956_s17, 1024, %s958_s18, %s966_s20, %s807_s30, %s807_s30, %s808_s21  }
  0x5a   : > { %p1087_p6 = scmp.ne.s32.totalorder %s1081_s6, 0 }
  0x5b   : > { %s997_s0 = sand.u32 (!%p1087_p6), 1, %s784_s23   ;;  %p1088_p10 = scmp.ne.s32.totalorder (!%p1087_p6), %s1079_s4, 0 }
  0x5c   : > { %170 = sbr.rel (%p1087_p6) target bundleno = 344 (0x158), region = 28  ;;  %s509_s28 = sshll.u32 (!%p1087_p6), %s997_s0, 6 }
  0x5d   : > { %s173_s7 = scalar_lea.sflag (!%p1087_p6), [#allocation5], %s997_s0  ;;  %s176_s9 = scalar_lea.vmem (!%p1087_p6), [#allocation4], %s509_s28 }
  0x63   : > { %767 = dma.done.wait (%p1088_p10), %s173_s7, 1024  }
  0x64   : > { %769 = vsyncadd (%p1088_p10), %s173_s7, 4294966272  ;;  %p1089_p2 = scmp.ne.s32.totalorder %s1077_s29, 0 }
  0x66   : > { %771 = dma.done.wait (%p1089_p2), [#allocation8], 384  }
  0x67   : > { %773 = vsyncadd (%p1089_p2), [#allocation8], 4294966912  ;;  %s512_s6 = sshll.u32 %s792_s25, 1  ;;  %v809_v0 = vmov 0   ;;  %v630_v1 = vld [vmem:[%s176_s9 + $0x4] ss:$8 sps:$4 sm:$0xff]  }
  0x68   : > { %278 = vmatprep.mubr.bf16.mxu0 %v809_v0  ;;  %365 = vmatprep.mubr.bf16.mxu1 %v809_v0  ;;  %s207_s17 = sld [smem:[#allocation3 + %s512_s6]]  ;;  %s293_s18 = sadd.s32 1, %s512_s6  ;;  %v632_v2 = vld [vmem:[%s176_s9 + $0x24] ss:$8 sps:$4 sm:$0xff]   ;;  %v634_v3 = vld [vmem:[%s176_s9] ss:$8 sps:$4 sm:$0xff]  }
  0x69   : > { %s294_s19 = sld [smem:[#allocation3 + %s293_s18]]  ;;  %246 = vmatprep.subr.bf16.mxu0 %v630_v1  ;;  %v635_v4 = vld [vmem:[%s176_s9 + $0x20] ss:$8 sps:$4 sm:$0xff]   ;;  %333 = vmatprep.subr.bf16.mxu1 %v632_v2  ;;  %v636_v5 = vld [vmem:[%s176_s9 + $0x14] ss:$8 sps:$4 sm:$0xff]   ;;  %vm242_vm0 = vcmask 261120  }
  0x6a   : > { %247 = vmatpush1.bf16.msra.mxu0 %v634_v3  ;;  %334 = vmatpush1.bf16.msra.mxu1 %v635_v4  ;;  %v638_v6 = vld [vmem:[%s176_s9 + $0x34] ss:$8 sps:$4 sm:$0xff]   ;;  %v640_v7 = vld [vmem:[%s176_s9 + $0x10] ss:$8 sps:$4 sm:$0xff]   ;;  %s200_s8 = scalar_lea.vmem [#allocation9], %s509_s28  ;;  %s548_s15 = sshll.u32 %s792_s25, 10 }
  0x6b   : > { %248 = vmatprep.subr.bf16.mxu0 %v636_v5  ;;  %v641_v8 = vld [vmem:[%s176_s9 + $0x30] ss:$8 sps:$4 sm:$0xff]   ;;  %335 = vmatprep.subr.bf16.mxu1 %v638_v6  ;;  %s398_s14 = sshll.u32 %s200_s8, 4  ;;  %s1020_s21 = scalar_lea.hbm %s1072_s3, %s548_s15  ;;  %s1015_s14 = int_to_ptr.vmem [resolvable:$true] %s398_s14 }
  0x6c   : > { %s382_s25 = scalar_lea.sflag [#allocation6], %s997_s0  ;;  %s712_s28 = scalar_lea.vmem %s1015_s14, 1024 }
  0x6d   : > { %p713_p7 = scmp.ne.s32.totalorder %s1015_s14, %s712_s28  ;;  %s810_s7 = smov [#allocation9]  }
  0x6e   : > { %s545_s20 = sshll.u32 %s207_s17, 3  ;;  %249 = vmatpush1.bf16.msra.mxu0 %v640_v7  ;;  %336 = vmatpush1.bf16.msra.mxu1 %v641_v8  ;;  %s716_s9 = sshll.u32 %s810_s7, 4  ;;  %s717_s9 = int_to_ptr.vmem [resolvable:$false] %s716_s9 }
  0x6f   : > { %s546_s12 = sshll.u32 %s294_s19, 3  ;;  %s210_s29 = scalar_lea.vmem [#allocation7], %s545_s20 }
  0x70   : > { %s297_s4 = scalar_lea.vmem [#allocation7], %s546_s12  ;;  %v642_v9 = vld [vmem:[%s210_s29] sm:$0xff]   ;;  %p714_p9 = pnand %p713_p7, %p941_p13 }
  0x71   : > { %v643_v10 = vld [vmem:[%s297_s4] sm:$0xff]   ;;  %520 = vmatmul.mubr.msk.bf16.vlgmr.msra.gmra.mrb[0].mxu0 %vm242_vm0, %v642_v9  ;;  %s718_s6 = scalar_lea.vmem %s717_s9, 2048  ;;  %p719_p1 = scmp.lt.s32.totalorder %s1015_s14, %s717_s9 }
  0x72   : > { %532 = vmatmul.mubr.msk.bf16.vlgmr.msra.gmra.mrb[0].mxu1 %vm242_vm0, %v643_v10  ;;  %p715_p11 = pneg %p714_p9  ;;  %p720_p0 = scmp.lt.s32.totalorder %s718_s6, %s712_s28 }
  0x74   : > { %p721_p3 = por %p720_p0, %p719_p1 }
  0x76   : > { %p722_p8 = pnand %p721_p3, %p715_p11 }
 0x144   : > { %v280_v11 = vpop.f32.mrb[0].mxu0 }
 0x145   : > { %v367_v12 = vpop.f32.mrb[0].mxu1  ;;  %289 = vst [vmem:[%s200_s8] sm:$0xff] %v280_v11  ;;  %v282_v13 = vpop.f32.mrb[1].mxu0 }
 0x146   : > { %533 = vst [vmem:[%s200_s8 + $0x20] sm:$0xff] %v367_v12  ;;  %v369_v14 = vpop.f32.mrb[1].mxu1  ;;  %290 = vst [vmem:[%s200_s8 + $0x8] sm:$0xff] %v282_v13  ;;  %v284_v15 = vpop.f32.mrb[2].mxu0 }
 0x147   : > { %534 = vst [vmem:[%s200_s8 + $0x28] sm:$0xff] %v369_v14  ;;  %v371_v16 = vpop.f32.mrb[2].mxu1  ;;  %291 = vst [vmem:[%s200_s8 + $0x10] sm:$0xff] %v284_v15  ;;  %v286_v17 = vpop.f32.mrb[3].mxu0 }
 0x148   : > { %535 = vst [vmem:[%s200_s8 + $0x30] sm:$0xff] %v371_v16  ;;  %v373_v18 = vpop.f32.mrb[3].mxu1  ;;  %292 = vst [vmem:[%s200_s8 + $0x18] sm:$0xff] %v286_v17 }
 0x149   : > { %536 = vst [vmem:[%s200_s8 + $0x38] sm:$0xff] %v373_v18 }
 0x14a   : > { %725 = shalt.err (!%p722_p8)
}
 0x14b   : > { %s726_s17 = scalar_lea.hbm %s1020_s21, 1024  ;;  %s730_s20 = scalar_lea.hbm %s1072_s3, 2048 }
 0x14c   : > { %p727_p12 = scmp.ne.s32.totalorder %s1020_s21, %s726_s17  ;;  %p731_p6 = scmp.lt.u32.totalorder %s1020_s21, %s1072_s3 }
 0x14d   : > { %p732_p10 = scmp.lt.u32.totalorder %s730_s20, %s726_s17  ;;  %p734_p7 = scmp.lt.u32.totalorder %s726_s17, %s1020_s21 }
 0x14e   : > { %p728_p4 = pnand %p727_p12, %p941_p13 }
 0x14f   : > { %p733_p2 = por %p732_p10, %p731_p6 }
 0x150   : > { %p729_p5 = pneg %p728_p4 }
 0x151   : > { %p735_p9 = por %p734_p7, %p733_p2 }
 0x153   : > { %p736_p11 = pnand %p735_p9, %p729_p5 }
 0x155   : > { %739 = shalt.err (!%p736_p11)
}
 0x156   : > { %s811_s4 = smov 256   ;;  %s812_s8 = smov 16  }
 0x157   : > { %555 = dma.vmem_to_hbm [thread:$0]  (%p941_p13), %s1015_s14, 1024, %s1020_s21, %s382_s25, %s811_s4, %s811_s4, %s812_s8  }
 0x158 PF: > { %s413_s15 = sand.u32 1, %s780_s22   ;;  %p1090_p1 = scmp.ne.s32.totalorder %s1080_s5, 0 }
 0x159   : > { %p1091_p0 = scmp.ge.s32.totalorder %s800_s27, 2  ;;  %s414_s16 = scalar_lea.sflag [#allocation6], %s413_s15 }
 0x15b   : > { %p566_p3 = pnand %p1091_p0, %p1090_p1 }
 0x15d   : > { %775 = dma.done.wait (!%p566_p3), %s414_s16, 1024  }
 0x15e   : > { %777 = vsyncadd (!%p566_p3), %s414_s16, 4294966272  ;;  %s24_s27 = sadd.s32 1, %s800_s27   ;;  %s1092_s22 = smov %s784_s23 }
 0x15f   : > { %p21_p8 = scmp.ge.s32.totalorder %s24_s27, 4   ;;  %s1093_s23 = smov %s788_s24 }
 0x160   : > { %s1094_s24 = smov %s950_s13  ;;  %s1095_s25 = smov %s796_s26 }
 0x161   : > { %s1096_s26 = smov %s1098_s10  ;;  %23 = sbr.rel (!%p21_p8) target bundleno = 19 (0x13), region = 81 }
 0x168   :  { %419 = vsyncpa [#allocation5], 1 }
 0x169   :  { %421 = vsyncpa [#allocation5 + $0x1], 1 }
 0x16a   :  { %422 = vsyncpa [#allocation8], 1 }
 0x16b   :  { %423 = vsyncpa [#allocation6], 1 }
 0x16c   :  { %425 = vsyncpa [#allocation6 + $0x1], 1 }

</bundles_post_ra>
